<compile_context>
chip_gen: v6e
topology: v6e:2x2x1
jax: 0.10.0
libtpu: 0.0.40
codegen_flags: <defaults>
</compile_context>

<pallas_src>
import functools
import math

import numpy as np
import jax
import jax.numpy as jnp
from jax.experimental import pallas as pl
from jax.experimental.pallas import tpu as pltpu


def _gen_loss_sums_kernel(x_ref, g_ref, out_ref, acc_ref, *, W, unit):
    """Per grid step: accumulate raw sums; at the last reduction step write the
    four sums into rows 0..3 of this chunk's (1, 8, 128) output block.
      acc[0] = sum |x-g|,  acc[1] = sum (x-g)^2,
      acc[2] = sum h-direction TV diffs^2,  acc[3] = sum w-direction TV diffs^2.
    """
    step = pl.program_id(1)
    TM, L = x_ref.shape                      # static block shape

    @pl.when(step == 0)
    def _init():
        acc_ref[0] = jnp.float32(0.0)
        acc_ref[1] = jnp.float32(0.0)
        acc_ref[2] = jnp.float32(0.0)
        acc_ref[3] = jnp.float32(0.0)

    x = x_ref[...].astype(jnp.float32)       # upcast per tile on the VPU
    g = g_ref[...].astype(jnp.float32)
    d = x - g

    s_abs = jnp.sum(jnp.abs(d))
    s_sq = jnp.sum(d * d)

    # --- w-direction TV: neighbouring lanes, mask pairs that wrap an image row ---
    lane = jax.lax.broadcasted_iota(jnp.int32, (TM, L - 1), 1)
    wd = jnp.where(lane % W != (W - 1), x[:, 1:L] - x[:, 0:L - 1], 0.0)
    s_w = jnp.sum(wd * wd)

    # --- h-direction TV ---
    s_h = jnp.float32(0.0)
    if L > W:
        # Adjacent image rows packed into the same lane-dense row: always valid
        # pairs, because a packed row never straddles two images (unit = H*W/L
        # packed rows per image is an integer).
        hd = x[:, W:L] - x[:, 0:L - W]
        s_h = s_h + jnp.sum(hd * hd)
    if TM > 1 and unit > 1:
        # Pairs crossing packed rows: last image row of packed row p vs first image
        # row of packed row p+1; invalid when p is the last packed row of an image.
        # Tiles start at image boundaries (TM % unit == 0), so the in-tile sublane
        # index modulo `unit` equals the global one.
        row = jax.lax.broadcasted_iota(jnp.int32, (TM - 1, W), 0)
        cd = jnp.where(row % unit != (unit - 1),
                       x[1:TM, 0:W] - x[0:TM - 1, L - W:L], 0.0)
        s_h = s_h + jnp.sum(cd * cd)

    acc_ref[0] += s_abs
    acc_ref[1] += s_sq
    acc_ref[2] += s_h
    acc_ref[3] += s_w

    @pl.when(step == pl.num_programs(1) - 1)
    def _finalize():
        rowi = jax.lax.broadcasted_iota(jnp.int32, (8, 128), 0)
        vals = (jnp.where(rowi == 0, acc_ref[0], 0.0)
                + jnp.where(rowi == 1, acc_ref[1], 0.0)
                + jnp.where(rowi == 2, acc_ref[2], 0.0)
                + jnp.where(rowi == 3, acc_ref[3], 0.0))
        out_ref[0] = vals


def _choose_packing(H, W, max_lane=1024):
    """Lane width L for the packed (N/L, L) view: each packed row holds whole image
    rows (W | L) and each image spans whole packed rows (L | H*W)."""
    L = (W * 128) // math.gcd(W, 128)        # lcm(W, 128)
    if L <= max_lane and (H * W) % L == 0:
        return L
    return W                                 # natural (B*C*H, W) fallback


def _pick_tile_rows(chunk_rows, total_rows, unit, align, max_rows):
    """Largest TM <= max_rows that is a multiple of `unit` (image alignment),
    divides chunk_rows, and is sublane-aligned or equal to the full array dim."""
    q = chunk_rows // unit                   # image row-groups per chunk
    divs = set()
    i = 1
    while i * i <= q:
        if q % i == 0:
            divs.add(i)
            divs.add(q // i)
        i += 1
    best = None
    for d in sorted(divs):
        tm = d * unit
        if tm > max_rows:
            break
        if tm % align == 0 or tm == total_rows:
            best = tm
    return best


def generator_loss(out_labels, out_images, ground_truth, texture=None,
                   tv_weight=1.0, num_chunks=2, max_block_bytes=4 << 20,
                   max_tile_rows=None):
    # `texture` mirrors the PyTorch signature; the reference forward never uses it.
    del texture
    B, C, H, W = out_images.shape
    assert ground_truth.shape == out_images.shape
    assert H >= 2 and W >= 2, "TV loss requires H >= 2 and W >= 2"

    images = B * C
    N = images * H * W

    # Stream both operands in their (promoted) native dtype; upcast in-kernel.
    stream_dtype = jnp.promote_types(out_images.dtype, ground_truth.dtype)
    if not jnp.issubdtype(stream_dtype, jnp.floating):
        stream_dtype = jnp.float32
    x = out_images.astype(stream_dtype)
    g = ground_truth.astype(stream_dtype)
    itemsize = jnp.dtype(stream_dtype).itemsize
    # Sublane alignment of the second-minor block dim (f32: 8, bf16/f16: 16, 8-bit: 32).
    align = 8 * max(1, 4 // max(1, itemsize))

    L = _choose_packing(H, W)
    P = N // L
    unit = (H * W) // L                      # packed rows per image

    # --- chunking (leading "parallel" axis; on v7x one chunk per TensorCore) ---
    num_chunks = max(1, int(num_chunks))
    if images % num_chunks != 0:
        num_chunks = 1

    budget_rows = max(unit, max_block_bytes // (L * itemsize))
    if max_tile_rows is not None:
        budget_rows = min(budget_rows, max(unit, int(max_tile_rows)))

    chunk_rows = P // num_chunks
    TM = _pick_tile_rows(chunk_rows, P, unit, align, budget_rows)
    if TM is None and num_chunks > 1:
        num_chunks = 1
        chunk_rows = P
        TM = _pick_tile_rows(chunk_rows, P, unit, align, budget_rows)
    if TM is None:
        # TODO(synk): partial-tile path; use the whole array as a single block.
        num_chunks = 1
        chunk_rows = P
        TM = P
    steps = chunk_rows // TM
    grid = (num_chunks, steps)

    # Free re-layouts: plain row-major reshapes, no transposes, no dtype copies.
    x_p = x.reshape(P, L)
    g_p = g.reshape(P, L)

    block_bytes = TM * L * itemsize
    vmem_limit = int(4 * block_bytes + (8 << 20))   # 2 inputs x 2 buffers + slack

    kernel = functools.partial(_gen_loss_sums_kernel, W=W, unit=unit)

    partials = pl.pallas_call(
        kernel,
        out_shape=jax.ShapeDtypeStruct((num_chunks, 8, 128), jnp.float32),
        grid=grid,
        in_specs=[
            pl.BlockSpec((TM, L), lambda c, s: (c * steps + s, 0)),
            pl.BlockSpec((TM, L), lambda c, s: (c * steps + s, 0)),
        ],
        out_specs=pl.BlockSpec((1, 8, 128), lambda c, s: (c, 0, 0)),
        scratch_shapes=[pltpu.SMEM((4,), jnp.float32)],
        compiler_params=pltpu.CompilerParams(
            dimension_semantics=("parallel", "arbitrary"),
            vmem_limit_bytes=vmem_limit,
        ),
        cost_estimate=pl.CostEstimate(
            flops=int(12 * N),
            transcendentals=0,
            bytes_accessed=int(2 * N * itemsize + num_chunks * 8 * 128 * 4),
        ),
    )(x_p, g_p)

    # Combine per-chunk partial sums and apply all scaling/weights in the wrapper.
    sums = jnp.sum(partials[:, 0:4, 0], axis=0)
    s_abs, s_sq, s_h, s_w = sums[0], sums[1], sums[2], sums[3]

    labels = out_labels.astype(jnp.float32)
    # adversarial = BCE(input=ones, target=labels) under torch's log(0) = -100 clamp.
    adversarial_loss = 100.0 * jnp.mean(1.0 - labels)

    image_loss = s_abs / float(N)
    fft_l = s_sq / float(B * C)              # Parseval: H*W*mean((x-gt)^2)
    tv_l = (float(tv_weight) * 2.0 / float(B)) * (
        s_h / float(C * (H - 1) * W) + s_w / float(C * H * (W - 1)))
    perception_loss = jnp.float32(0.0)       # VGG16 branch is never evaluated in forward

    loss_all = (image_loss + 0.01 * adversarial_loss + 0.06 * perception_loss
                + 0.002 * tv_l + 2e-05 * fft_l + 0.06 * fft_l)
    return loss_all, image_loss, adversarial_loss, perception_loss, tv_l, fft_l


def _reference(out_labels, out_images, ground_truth, tv_weight=1.0):
    """Pure-JAX reference (FFT term via the exact Parseval identity)."""
    B, C, H, W = out_images.shape
    d = out_images - ground_truth
    image_loss = jnp.mean(jnp.abs(d))
    adversarial_loss = 100.0 * jnp.mean(1.0 - out_labels)
    count_h = C * (H - 1) * W
    count_w = C * H * (W - 1)
    h_tv = jnp.sum((out_images[:, :, 1:, :] - out_images[:, :, :-1, :]) ** 2)
    w_tv = jnp.sum((out_images[:, :, :, 1:] - out_images[:, :, :, :-1]) ** 2)
    tv_loss = tv_weight * 2.0 * (h_tv / count_h + w_tv / count_w) / B
    fft_loss = H * W * jnp.mean(d ** 2)
    perception_loss = 0.0
    loss_all = (image_loss + 0.01 * adversarial_loss + 0.06 * perception_loss
                + 0.002 * tv_loss + 2e-05 * fft_loss + 0.06 * fft_loss)
    return loss_all, image_loss, adversarial_loss, perception_loss, tv_loss, fft_loss


def _check(results, refs, tag):
    names = ["loss_all", "image", "adversarial", "perception", "tv", "fft"]
    for name, got, ref in zip(names, results, refs):
        np.testing.assert_allclose(np.asarray(got), np.asarray(ref),
                                   rtol=2e-3, atol=1e-4,
                                   err_msg=f"{tag}: mismatch in {name}")


if __name__ == "__main__":
    key = jax.random.PRNGKey(0)
    k1, k2, k3, k4, k5, k6, k7, k8, k9 = jax.random.split(key, 9)

    # 1) f32, lane-dense L=128 packing, 2-chunk parallel grid.
    B, C, H, W = 2, 4, 16, 16
    imgs = jax.random.uniform(k1, (B, C, H, W), dtype=jnp.float32)
    gts = jax.random.uniform(k2, (B, C, H, W), dtype=jnp.float32)
    labels = jax.random.uniform(k3, (B, 1), dtype=jnp.float32)
    refs = _reference(labels, imgs, gts)
    res = jax.block_until_ready(generator_loss(labels, imgs, gts, texture=None))
    _check(res, refs, "f32/packed/2-chunk")

    # 2) Same data, single chunk, forced multi-step reduction (exercises accumulators).
    res = jax.block_until_ready(
        generator_loss(labels, imgs, gts, texture=None, num_chunks=1, max_tile_rows=8))
    _check(res, refs, "f32/packed/multi-step")

    # 3) lcm(W,128) packing: W=24 -> L=384 (previously the lane-sparse fallback).
    B2, C2, H2, W2 = 2, 3, 16, 24
    imgs2 = jax.random.uniform(k4, (B2, C2, H2, W2), dtype=jnp.float32)
    gts2 = jax.random.uniform(k5, (B2, C2, H2, W2), dtype=jnp.float32)
    refs2 = _reference(labels, imgs2, gts2)
    res2 = jax.block_until_ready(generator_loss(labels, imgs2, gts2, texture=None))
    _check(res2, refs2, "f32/lcm-packed")

    # 4) True fallback layout (lcm(24,128)=384 does not divide H*W=288), 2 chunks.
    B3, C3, H3, W3 = 2, 2, 12, 24
    imgs3 = jax.random.uniform(k6, (B3, C3, H3, W3), dtype=jnp.float32)
    gts3 = jax.random.uniform(k7, (B3, C3, H3, W3), dtype=jnp.float32)
    refs3 = _reference(labels, imgs3, gts3)
    res3 = jax.block_until_ready(generator_loss(labels, imgs3, gts3, texture=None))
    _check(res3, refs3, "f32/fallback")

    # 5) bf16 inputs streamed natively and upcast in-kernel.
    B4, C4, H4, W4 = 4, 4, 16, 16
    imgs4 = jax.random.uniform(k8, (B4, C4, H4, W4), dtype=jnp.float32).astype(jnp.bfloat16)
    gts4 = jax.random.uniform(k9, (B4, C4, H4, W4), dtype=jnp.float32).astype(jnp.bfloat16)
    labels4 = jax.random.uniform(k3, (B4, 1), dtype=jnp.float32)
    refs4 = _reference(labels4, imgs4.astype(jnp.float32), gts4.astype(jnp.float32))
    res4 = jax.block_until_ready(generator_loss(labels4, imgs4, gts4, texture=None))
    _check(res4, refs4, "bf16/packed/2-chunk")

    print("KERNEL_OK")
</pallas_src>

<mosaic_0001>
module attributes {stable_mosaic.version = 11 : i64} {
  func.func @_gen_loss_sums_kernel(%arg0: i32, %arg1: i32, %arg2: memref<8x128xf32, #tpu.memory_space<vmem>>, %arg3: memref<8x128xf32, #tpu.memory_space<vmem>>, %arg4: memref<1x8x128xf32, #tpu.memory_space<vmem>>, %arg5: memref<4xf32, #tpu.memory_space<smem>>) attributes {dimension_semantics = [#tpu.dimension_semantics<parallel>, #tpu.dimension_semantics<arbitrary>], iteration_bounds = array<i64: 2, 1>, scalar_prefetch = 0 : i64, scratch_operands = 1 : i64, tpu.core_type = #tpu.core_type<tc>, window_params = [{transform_indices = @transform_0, window_bounds = array<i64: 8, 128>}, {transform_indices = @transform_1, window_bounds = array<i64: 8, 128>}, {transform_indices = @transform_2, window_bounds = array<i64: 1, 8, 128>}]} {
    %c0_i32 = arith.constant 0 : i32
    %0 = arith.cmpi eq, %arg1, %c0_i32 : i32
    %1 = arith.extui %0 : i1 to i32
    %c0_i32_0 = arith.constant 0 : i32
    %2 = arith.cmpi ne, %1, %c0_i32_0 : i32
    scf.if %2 {
      %cst_28 = arith.constant 0.000000e+00 : f32
      %c0_29 = arith.constant 0 : index
      %99 = memref.load %arg5[%c0_29] : memref<4xf32, #tpu.memory_space<smem>>
      memref.store %cst_28, %arg5[%c0_29] : memref<4xf32, #tpu.memory_space<smem>>
      %cst_30 = arith.constant 0.000000e+00 : f32
      %c1_31 = arith.constant 1 : index
      %100 = memref.load %arg5[%c1_31] : memref<4xf32, #tpu.memory_space<smem>>
      memref.store %cst_30, %arg5[%c1_31] : memref<4xf32, #tpu.memory_space<smem>>
      %cst_32 = arith.constant 0.000000e+00 : f32
      %c2_33 = arith.constant 2 : index
      %101 = memref.load %arg5[%c2_33] : memref<4xf32, #tpu.memory_space<smem>>
      memref.store %cst_32, %arg5[%c2_33] : memref<4xf32, #tpu.memory_space<smem>>
      %cst_34 = arith.constant 0.000000e+00 : f32
      %c3_35 = arith.constant 3 : index
      %102 = memref.load %arg5[%c3_35] : memref<4xf32, #tpu.memory_space<smem>>
      memref.store %cst_34, %arg5[%c3_35] : memref<4xf32, #tpu.memory_space<smem>>
    } else {
    }
    %c0 = arith.constant 0 : index
    %c0_1 = arith.constant 0 : index
    %3 = vector.load %arg2[%c0, %c0_1] : memref<8x128xf32, #tpu.memory_space<vmem>>, vector<8x128xf32>
    %c0_2 = arith.constant 0 : index
    %c0_3 = arith.constant 0 : index
    %4 = vector.load %arg3[%c0_2, %c0_3] : memref<8x128xf32, #tpu.memory_space<vmem>>, vector<8x128xf32>
    %5 = arith.subf %3, %4 : vector<8x128xf32>
    %6 = math.absf %5 : vector<8x128xf32>
    %7 = vector.shape_cast %6 : vector<8x128xf32> to vector<1x8x128xf32>
    %cst = arith.constant dense<0.000000e+00> : vector<1xf32>
    %8 = vector.multi_reduction <add>, %7, %cst [1, 2] : vector<1x8x128xf32> to vector<1xf32>
    %9 = vector.shape_cast %8 : vector<1xf32> to vector<1x1x1xf32>
    %10 = vector.extract %9[0, 0, 0] : f32 from vector<1x1x1xf32>
    %11 = arith.mulf %5, %5 : vector<8x128xf32>
    %12 = vector.shape_cast %11 : vector<8x128xf32> to vector<1x8x128xf32>
    %cst_4 = arith.constant dense<0.000000e+00> : vector<1xf32>
    %13 = vector.multi_reduction <add>, %12, %cst_4 [1, 2] : vector<1x8x128xf32> to vector<1xf32>
    %14 = vector.shape_cast %13 : vector<1xf32> to vector<1x1x1xf32>
    %15 = vector.extract %14[0, 0, 0] : f32 from vector<1x1x1xf32>
    %16 = tpu.iota {dimensions = array<i32: 1>} : vector<8x127xi32>
    %c16_i32 = arith.constant 16 : i32
    %c0_i32_5 = arith.constant 0 : i32
    %17 = arith.cmpi eq, %c16_i32, %c0_i32_5 : i32
    %c1_i32 = arith.constant 1 : i32
    %18 = arith.select %17, %c1_i32, %c16_i32 : i32
    %19 = vector.broadcast %18 : i32 to vector<8x127xi32>
    %20 = arith.remsi %16, %19 : vector<8x127xi32>
    %c0_i32_6 = arith.constant 0 : i32
    %21 = vector.broadcast %c0_i32_6 : i32 to vector<8x127xi32>
    %22 = arith.cmpi ne, %20, %21 : vector<8x127xi32>
    %c0_i32_7 = arith.constant 0 : i32
    %23 = vector.broadcast %c0_i32_7 : i32 to vector<8x127xi32>
    %24 = arith.cmpi slt, %20, %23 : vector<8x127xi32>
    %c0_i32_8 = arith.constant 0 : i32
    %25 = arith.cmpi slt, %18, %c0_i32_8 : i32
    %26 = vector.broadcast %25 : i1 to vector<8x127xi1>
    %27 = vector.broadcast %26 : vector<8x127xi1> to vector<8x127xi1>
    %28 = arith.xori %24, %27 : vector<8x127xi1>
    %29 = arith.andi %28, %22 : vector<8x127xi1>
    %30 = vector.broadcast %18 : i32 to vector<8x127xi32>
    %31 = arith.addi %20, %30 : vector<8x127xi32>
    %32 = arith.select %29, %31, %20 : vector<8x127xi1>, vector<8x127xi32>
    %c15_i32 = arith.constant 15 : i32
    %33 = vector.broadcast %c15_i32 : i32 to vector<8x127xi32>
    %34 = arith.cmpi ne, %32, %33 : vector<8x127xi32>
    %35 = vector.extract_strided_slice %3 {offsets = [0, 1], sizes = [8, 127], strides = [1, 1]} : vector<8x128xf32> to vector<8x127xf32>
    %36 = vector.extract_strided_slice %3 {offsets = [0, 0], sizes = [8, 127], strides = [1, 1]} : vector<8x128xf32> to vector<8x127xf32>
    %37 = arith.subf %35, %36 : vector<8x127xf32>
    %cst_9 = arith.constant 0.000000e+00 : f32
    %38 = vector.broadcast %cst_9 : f32 to vector<8x127xf32>
    %39 = arith.select %34, %37, %38 : vector<8x127xi1>, vector<8x127xf32>
    %40 = arith.mulf %39, %39 : vector<8x127xf32>
    %41 = vector.shape_cast %40 : vector<8x127xf32> to vector<1x8x127xf32>
    %cst_10 = arith.constant dense<0.000000e+00> : vector<1xf32>
    %42 = vector.multi_reduction <add>, %41, %cst_10 [1, 2] : vector<1x8x127xf32> to vector<1xf32>
    %43 = vector.shape_cast %42 : vector<1xf32> to vector<1x1x1xf32>
    %44 = vector.extract %43[0, 0, 0] : f32 from vector<1x1x1xf32>
    %45 = vector.extract_strided_slice %3 {offsets = [0, 16], sizes = [8, 112], strides = [1, 1]} : vector<8x128xf32> to vector<8x112xf32>
    %46 = vector.extract_strided_slice %3 {offsets = [0, 0], sizes = [8, 112], strides = [1, 1]} : vector<8x128xf32> to vector<8x112xf32>
    %47 = arith.subf %45, %46 : vector<8x112xf32>
    %48 = arith.mulf %47, %47 : vector<8x112xf32>
    %49 = vector.shape_cast %48 : vector<8x112xf32> to vector<1x8x112xf32>
    %cst_11 = arith.constant dense<0.000000e+00> : vector<1xf32>
    %50 = vector.multi_reduction <add>, %49, %cst_11 [1, 2] : vector<1x8x112xf32> to vector<1xf32>
    %51 = vector.shape_cast %50 : vector<1xf32> to vector<1x1x1xf32>
    %52 = vector.extract %51[0, 0, 0] : f32 from vector<1x1x1xf32>
    %cst_12 = arith.constant 0.000000e+00 : f32
    %53 = arith.addf %cst_12, %52 : f32
    %54 = tpu.iota {dimensions = array<i32: 0>} : vector<7x16xi32>
    %c2_i32 = arith.constant 2 : i32
    %c0_i32_13 = arith.constant 0 : i32
    %55 = arith.cmpi eq, %c2_i32, %c0_i32_13 : i32
    %c1_i32_14 = arith.constant 1 : i32
    %56 = arith.select %55, %c1_i32_14, %c2_i32 : i32
    %57 = vector.broadcast %56 : i32 to vector<7x16xi32>
    %58 = arith.remsi %54, %57 : vector<7x16xi32>
    %c0_i32_15 = arith.constant 0 : i32
    %59 = vector.broadcast %c0_i32_15 : i32 to vector<7x16xi32>
    %60 = arith.cmpi ne, %58, %59 : vector<7x16xi32>
    %c0_i32_16 = arith.constant 0 : i32
    %61 = vector.broadcast %c0_i32_16 : i32 to vector<7x16xi32>
    %62 = arith.cmpi slt, %58, %61 : vector<7x16xi32>
    %c0_i32_17 = arith.constant 0 : i32
    %63 = arith.cmpi slt, %56, %c0_i32_17 : i32
    %64 = vector.broadcast %63 : i1 to vector<7x16xi1>
    %65 = vector.broadcast %64 : vector<7x16xi1> to vector<7x16xi1>
    %66 = arith.xori %62, %65 : vector<7x16xi1>
    %67 = arith.andi %66, %60 : vector<7x16xi1>
    %68 = vector.broadcast %56 : i32 to vector<7x16xi32>
    %69 = arith.addi %58, %68 : vector<7x16xi32>
    %70 = arith.select %67, %69, %58 : vector<7x16xi1>, vector<7x16xi32>
    %c1_i32_18 = arith.constant 1 : i32
    %71 = vector.broadcast %c1_i32_18 : i32 to vector<7x16xi32>
    %72 = arith.cmpi ne, %70, %71 : vector<7x16xi32>
    %73 = vector.extract_strided_slice %3 {offsets = [1, 0], sizes = [7, 16], strides = [1, 1]} : vector<8x128xf32> to vector<7x16xf32>
    %74 = vector.extract_strided_slice %3 {offsets = [0, 112], sizes = [7, 16], strides = [1, 1]} : vector<8x128xf32> to vector<7x16xf32>
    %75 = arith.subf %73, %74 : vector<7x16xf32>
    %cst_19 = arith.constant 0.000000e+00 : f32
    %76 = vector.broadcast %cst_19 : f32 to vector<7x16xf32>
    %77 = arith.select %72, %75, %76 : vector<7x16xi1>, vector<7x16xf32>
    %78 = arith.mulf %77, %77 : vector<7x16xf32>
    %79 = vector.shape_cast %78 : vector<7x16xf32> to vector<1x7x16xf32>
    %cst_20 = arith.constant dense<0.000000e+00> : vector<1xf32>
    %80 = vector.multi_reduction <add>, %79, %cst_20 [1, 2] : vector<1x7x16xf32> to vector<1xf32>
    %81 = vector.shape_cast %80 : vector<1xf32> to vector<1x1x1xf32>
    %82 = vector.extract %81[0, 0, 0] : f32 from vector<1x1x1xf32>
    %83 = arith.addf %53, %82 : f32
    %c0_21 = arith.constant 0 : index
    %84 = memref.load %arg5[%c0_21] : memref<4xf32, #tpu.memory_space<smem>>
    %85 = arith.addf %84, %10 : f32
    %c0_22 = arith.constant 0 : index
    %86 = memref.load %arg5[%c0_22] : memref<4xf32, #tpu.memory_space<smem>>
    memref.store %85, %arg5[%c0_22] : memref<4xf32, #tpu.memory_space<smem>>
    %c1 = arith.constant 1 : index
    %87 = memref.load %arg5[%c1] : memref<4xf32, #tpu.memory_space<smem>>
    %88 = arith.addf %87, %15 : f32
    %c1_23 = arith.constant 1 : index
    %89 = memref.load %arg5[%c1_23] : memref<4xf32, #tpu.memory_space<smem>>
    memref.store %88, %arg5[%c1_23] : memref<4xf32, #tpu.memory_space<smem>>
    %c2 = arith.constant 2 : index
    %90 = memref.load %arg5[%c2] : memref<4xf32, #tpu.memory_space<smem>>
    %91 = arith.addf %90, %83 : f32
    %c2_24 = arith.constant 2 : index
    %92 = memref.load %arg5[%c2_24] : memref<4xf32, #tpu.memory_space<smem>>
    memref.store %91, %arg5[%c2_24] : memref<4xf32, #tpu.memory_space<smem>>
    %c3 = arith.constant 3 : index
    %93 = memref.load %arg5[%c3] : memref<4xf32, #tpu.memory_space<smem>>
    %94 = arith.addf %93, %44 : f32
    %c3_25 = arith.constant 3 : index
    %95 = memref.load %arg5[%c3_25] : memref<4xf32, #tpu.memory_space<smem>>
    memref.store %94, %arg5[%c3_25] : memref<4xf32, #tpu.memory_space<smem>>
    %c0_i32_26 = arith.constant 0 : i32
    %96 = arith.cmpi eq, %arg1, %c0_i32_26 : i32
    %97 = arith.extui %96 : i1 to i32
    %c0_i32_27 = arith.constant 0 : i32
    %98 = arith.cmpi ne, %97, %c0_i32_27 : i32
    scf.if %98 {
      %99 = tpu.iota {dimensions = array<i32: 0>} : vector<8x128xi32>
      %c0_i32_28 = arith.constant 0 : i32
      %100 = vector.broadcast %c0_i32_28 : i32 to vector<8x128xi32>
      %101 = arith.cmpi eq, %99, %100 : vector<8x128xi32>
      %c0_29 = arith.constant 0 : index
      %102 = memref.load %arg5[%c0_29] : memref<4xf32, #tpu.memory_space<smem>>
      %cst_30 = arith.constant 0.000000e+00 : f32
      %103 = vector.broadcast %102 : f32 to vector<8x128xf32>
      %104 = vector.broadcast %cst_30 : f32 to vector<8x128xf32>
      %105 = arith.select %101, %103, %104 : vector<8x128xi1>, vector<8x128xf32>
      %c1_i32_31 = arith.constant 1 : i32
      %106 = vector.broadcast %c1_i32_31 : i32 to vector<8x128xi32>
      %107 = arith.cmpi eq, %99, %106 : vector<8x128xi32>
      %c1_32 = arith.constant 1 : index
      %108 = memref.load %arg5[%c1_32] : memref<4xf32, #tpu.memory_space<smem>>
      %cst_33 = arith.constant 0.000000e+00 : f32
      %109 = vector.broadcast %108 : f32 to vector<8x128xf32>
      %110 = vector.broadcast %cst_33 : f32 to vector<8x128xf32>
      %111 = arith.select %107, %109, %110 : vector<8x128xi1>, vector<8x128xf32>
      %112 = arith.addf %105, %111 : vector<8x128xf32>
      %c2_i32_34 = arith.constant 2 : i32
      %113 = vector.broadcast %c2_i32_34 : i32 to vector<8x128xi32>
      %114 = arith.cmpi eq, %99, %113 : vector<8x128xi32>
      %c2_35 = arith.constant 2 : index
      %115 = memref.load %arg5[%c2_35] : memref<4xf32, #tpu.memory_space<smem>>
      %cst_36 = arith.constant 0.000000e+00 : f32
      %116 = vector.broadcast %115 : f32 to vector<8x128xf32>
      %117 = vector.broadcast %cst_36 : f32 to vector<8x128xf32>
      %118 = arith.select %114, %116, %117 : vector<8x128xi1>, vector<8x128xf32>
      %119 = arith.addf %112, %118 : vector<8x128xf32>
      %c3_i32 = arith.constant 3 : i32
      %120 = vector.broadcast %c3_i32 : i32 to vector<8x128xi32>
      %121 = arith.cmpi eq, %99, %120 : vector<8x128xi32>
      %c3_37 = arith.constant 3 : index
      %122 = memref.load %arg5[%c3_37] : memref<4xf32, #tpu.memory_space<smem>>
      %cst_38 = arith.constant 0.000000e+00 : f32
      %123 = vector.broadcast %122 : f32 to vector<8x128xf32>
      %124 = vector.broadcast %cst_38 : f32 to vector<8x128xf32>
      %125 = arith.select %121, %123, %124 : vector<8x128xi1>, vector<8x128xf32>
      %126 = arith.addf %119, %125 : vector<8x128xf32>
      %c0_39 = arith.constant 0 : index
      %c0_40 = arith.constant 0 : index
      %c0_41 = arith.constant 0 : index
      %127 = vector.load %arg4[%c0_39, %c0_40, %c0_41] : memref<1x8x128xf32, #tpu.memory_space<vmem>>, vector<1x8x128xf32>
      %128 = vector.shape_cast %127 : vector<1x8x128xf32> to vector<8x128xf32>
      %129 = vector.shape_cast %126 : vector<8x128xf32> to vector<1x8x128xf32>
      tpu.vector_store %arg4[%c0_39, %c0_40, %c0_41], %129 {strides = array<i32>} : memref<1x8x128xf32, #tpu.memory_space<vmem>>, vector<1x8x128xf32>,
    } else {
    }
    return
  }
  func.func @transform_0(%arg0: i32, %arg1: i32) -> (i32, i32) {
    %c1_i32 = arith.constant 1 : i32
    %0 = arith.muli %arg0, %c1_i32 : i32
    %1 = arith.addi %0, %arg1 : i32
    %c0_i32 = arith.constant 0 : i32
    %c0_i32_0 = arith.constant 0 : i32
    return %1, %c0_i32 : i32, i32
  }
  func.func @transform_1(%arg0: i32, %arg1: i32) -> (i32, i32) {
    %c1_i32 = arith.constant 1 : i32
    %0 = arith.muli %arg0, %c1_i32 : i32
    %1 = arith.addi %0, %arg1 : i32
    %c0_i32 = arith.constant 0 : i32
    %c0_i32_0 = arith.constant 0 : i32
    return %1, %c0_i32 : i32, i32
  }
  func.func @transform_2(%arg0: i32, %arg1: i32) -> (i32, i32, i32) {
    %c0_i32 = arith.constant 0 : i32
    %c0_i32_0 = arith.constant 0 : i32
    %c0_i32_1 = arith.constant 0 : i32
    return %arg0, %c0_i32, %c0_i32_0 : i32, i32, i32
  }
}

</mosaic_0001>

<bundles_post_ra>
// kernel: tpu_custom_call.1
= control target key start
LH: loop header
LB: loop body
LE: loop exit
PB: predicated region body
PF: predicated region fallthrough
CT: control target
= control target key end

     0   :  { %7 = vsyncpa [#allocation4], 0  ;;  %s942_s0 = inlined_call_operand.hbm [shape: f32[16,128], index: 0, kind: input, shape index: {}]   ;;  %s943_s1 = inlined_call_operand.hbm [shape: f32[16,128], index: 1, kind: input, shape index: {}]   ;;  %s944_s2 = inlined_call_operand.hbm [shape: f32[2,8,128], index: 2, kind: output, shape index: {}]  }
   0x1   :  { %9 = vsyncpa [#allocation4 + $0x1], 0 }
   0x2   :  { %10 = vsyncpa [#allocation7], 0 }
   0x3   :  { %12 = vsyncpa [#allocation7 + $0x1], 0 }
   0x4   :  { %13 = vsyncpa [#allocation5], 0 }
   0x5   :  { %15 = vsyncpa [#allocation5 + $0x1], 0  ;;  %s769_s9 = smov 0   ;;  %s771_s10 = smov 0  }
   0x6   :  { %s773_s11 = smov 0   ;;  %s775_s12 = smov 0  }
   0x7   :  { %s777_s13 = smov 0   ;;  %s779_s14 = smov 0  }
   0x8 LB: > { %s502_s15 = sadd.s32 4294967295, %s745_s14   ;;  %s503_s16 = sadd.s32 4294967294, %s745_s14   ;;  %s745_s14 = sphi %s779_s14, %s21_s14   ;;  %s741_s13 = sphi %s777_s13, %s956_s13   ;;  %s737_s12 = sphi %s775_s12, %s955_s12   ;;  %s733_s11 = sphi %s773_s11, %s954_s11   ;;  %s729_s10 = sphi %s771_s10, %s953_s10   ;;  %s725_s9 = sphi %s769_s9, %s952_s9  }
   0x9   : > { %s33_s17 = sadd.s32 1, %s741_s13  ;;  %s42_s18 = sadd.s32 1, %s733_s11 }
   0xa   : > { %p35_p0 = scmp.ge.s32.totalorder %s33_s17, 2  ;;  %p49_p1 = scmp.ne.s32.totalorder %s733_s11, %s729_s10 }
   0xb   : > { %p50_p2 = scmp.eq.s32.totalorder %s745_s14, 0  ;;  %p55_p3 = scmp.ne.s32.totalorder %s729_s10, %s725_s9 }
   0xc   : > { %s958_s17 = smov (%p35_p0, %s33_s17), 0  ;;  %p56_p5 = scmp.eq.s32.totalorder %s502_s15, 0 }
   0xd   : > { %p810_p4 = por %p50_p2, %p49_p1  ;;  %s39_s20 = ssub.s32 %s741_s13, %s958_s17 }
   0xe   : > { %p107_p6 = scmp.eq.s32.totalorder %s502_s15, 1  ;;  %p40_p7 = scmp.eq.s32.totalorder %s39_s20, 0 }
   0xf   : > { %p816_p8 = por %p56_p5, %p55_p3  ;;  %p113_p10 = scmp.eq.s32.totalorder %s503_s16, 1 }
  0x10   : > { %p820_p9 = por %p107_p6, %p49_p1  ;;  %p551_p13 = scmp.lt.s32.totalorder %s745_s14, 2 }
  0x11   : > { %s825_s23 = scalar_select %p40_p7, %s733_s11, %s42_s18  }
  0x12   : > { %p827_p11 = por %p113_p10, %p55_p3  ;;  %s834_s25 = sand.u32 1, %s733_s11  }
  0x13   : > { %s506_s26 = sshll.u32 %s834_s25, 3  ;;  %s507_s27 = sshll.u32 %s741_s13, 7 }
  0x14   : > { %s143_s30 = scalar_lea.hbm %s942_s0, %s507_s27  ;;  %s137_s3 = scalar_lea.vmem [#allocation3], %s506_s26 }
  0x15   : > { %s145_s4 = sshll.u32 %s137_s3, 4  ;;  %p843_p0 = pnand %p551_p13, %p810_p4  ;;  %s146_s4 = int_to_ptr.vmem [resolvable:$true] %s145_s4 }
  0x16   : > { %p510_p1 = scmp.ge.s32.totalorder %s745_s14, 1  ;;  %p169_p2 = scmp.lt.s32.totalorder %s745_s14, 3 }
  0x17   : > { %s134_s6 = scalar_lea.sflag [#allocation4], %s834_s25  ;;  %p607_p3 = pneg %p843_p0 }
  0x18   : > { %s618_s7 = scalar_lea.vmem %s146_s4, 128  ;;  %s747_s8 = smov [#allocation3]  }
  0x19   : > { %p619_p5 = scmp.ne.s32.totalorder %s146_s4, %s618_s7  ;;  %s623_s15 = sshll.u32 %s747_s8, 4  ;;  %s624_s15 = int_to_ptr.vmem [resolvable:$false] %s623_s15 }
  0x1a   : > { %s625_s16 = scalar_lea.vmem %s624_s15, 256  ;;  %p626_p4 = scmp.lt.s32.totalorder %s146_s4, %s624_s15 }
  0x1b   : > { %p621_p6 = pnand %p619_p5, %p607_p3  ;;  %p627_p10 = scmp.lt.s32.totalorder %s625_s16, %s618_s7 }
  0x1d   : > { %p622_p7 = pneg %p621_p6  ;;  %p628_p13 = por %p627_p10, %p626_p4 }
  0x1f   : > { %p629_p12 = pnand %p628_p13, %p622_p7 }
  0x21   : > { %632 = shalt.err (!%p629_p12)
}
  0x22   : > { %543 = dma.hbm_to_vmem [thread:$0]  (!%p843_p0), %s143_s30, 128, %s146_s4, %s134_s6  }
  0x23   : > { %p861_p5 = pnand %p510_p1, %p169_p2  ;;  %s162_s28 = scalar_lea.hbm %s943_s1, %s507_s27 }
  0x24   : > { %s156_s29 = scalar_lea.vmem [#allocation6], %s506_s26  ;;  %s153_s7 = scalar_lea.sflag [#allocation7], %s834_s25 }
  0x25   : > { %s164_s3 = sshll.u32 %s156_s29, 4  ;;  %s748_s30 = smov [#allocation6]   ;;  %s165_s3 = int_to_ptr.vmem [resolvable:$true] %s164_s3 }
  0x26   : > { %s646_s8 = scalar_lea.vmem %s165_s3, 128  ;;  %s651_s4 = sshll.u32 %s748_s30, 4  ;;  %s652_s4 = int_to_ptr.vmem [resolvable:$false] %s651_s4 }
  0x27   : > { %p647_p12 = scmp.ne.s32.totalorder %s165_s3, %s646_s8  ;;  %s653_s6 = scalar_lea.vmem %s652_s4, 256 }
  0x28   : > { %p654_p1 = scmp.lt.s32.totalorder %s165_s3, %s652_s4  ;;  %p655_p2 = scmp.lt.s32.totalorder %s653_s6, %s646_s8 }
  0x29   : > { %p649_p6 = pnand %p647_p12, %p607_p3 }
  0x2a   : > { %p656_p4 = por %p655_p2, %p654_p1 }
  0x2b   : > { %p650_p7 = pneg %p649_p6 }
  0x2d   : > { %p657_p10 = pnand %p656_p4, %p650_p7 }
  0x2f   : > { %660 = shalt.err (!%p657_p10)
}
  0x30   : > { %546 = dma.hbm_to_vmem [thread:$0]  (!%p843_p0), %s162_s28, 128, %s165_s3, %s153_s7  }
  0x31   : > { %173 = sbr.rel (%p861_p5) target bundleno = 519 (0x207), region = 28  ;;  %s877_s25 = sand.u32 (!%p861_p5), 1, %s729_s10  }
  0x32   : > { %s880_s26 = sshll.u32 (!%p861_p5), %s877_s25, 3  ;;  %s176_s27 = scalar_lea.sflag (!%p861_p5), [#allocation4], %s877_s25 }
  0x33   : > { %s179_s15 = scalar_lea.vmem (!%p861_p5), [#allocation3], %s880_s26 }
  0x36   : > { %712 = dma.done.wait (%p816_p8), %s176_s27, 128  }
  0x37   : > { %714 = vsyncadd (%p816_p8), %s176_s27, 4294967168  ;;  %s185_s5 = scalar_lea.sflag [#allocation7], %s877_s25  ;;  %s188_s16 = scalar_lea.vmem [#allocation6], %s880_s26 }
  0x38   : > { %716 = dma.done.wait (%p816_p8), %s185_s5, 128  }
  0x39   : > { %718 = vsyncadd (%p816_p8), %s185_s5, 4294967168  ;;  %v228_v0 = vld [vmem:[%s179_s15] sm:$0xff]  ;;  %s749_s18 = smov 1   ;;  %s750_s19 = smov 16   ;;  %v229_v7 = vld [vmem:[%s188_s16] sm:$0xff]  ;;  %v251_v11 = vlaneseq  ;;  %vm277_vm2 = vcmask 1039360  }
  0x3a   : > { %267 = vrot.lane.b32.xlu0 %v228_v0, %s749_s18  ;;  %v324_v1 = vrot.slane %v228_v0, 7  ;;  %s751_s20 = smov 127   ;;  %s752_s28 = smov 112   ;;  %v230_v8 = vsub.f32 %v228_v0, %v229_v7  ;;  %vm297_vm3 = vcmask 916480   ;;  %vm334_vm4 = vcmask 129024  }
  0x3b   : > { %v252_v13 = vand.u32 127, %v251_v11  ;;  %v894_v14 = vshrl.u32 %v251_v11, 7  ;;  %s521_s4 = sshll.u32 %s737_s12, 7  ;;  %s213_s6 = scalar_lea.vmem [#allocation8], %s880_s26 }
  0x3c   : > { %325 = vrot.lane.b32.xlu1 %v324_v1, %s750_s19  ;;  %v231_v9 = vand.u32 2147483647, %v230_v8  ;;  %v241_v10 = vmul.f32 %v230_v8, %v230_v8  ;;  %s399_s27 = sshll.u32 %s213_s6, 4  ;;  %s397_s16 = scalar_lea.hbm %s944_s2, %s521_s4  ;;  %s400_s27 = int_to_ptr.vmem [resolvable:$true] %s399_s27 }
  0x3d   : > { %v257_v16 = vand.u32 15, %v252_v13  ;;  %v315_v17 = vand.u32 1, %v894_v14  ;;  %vm365_vm5 = vcmp.eq.s32.totalorder %v894_v14, 0  ;;  %vm369_vm6 = vcmp.eq.s32.totalorder %v894_v14, 1  ;;  %s386_s18 = scalar_lea.sflag [#allocation5], %s877_s25 }
  0x3e   : > { %288 = vrot.lane.b32.xlu0 %v228_v0, %s750_s19  ;;  %vm374_vm7 = vcmp.eq.s32.totalorder %v894_v14, 2  ;;  %vm379_vm8 = vcmp.eq.s32.totalorder %v894_v14, 3  ;;  %s661_s19 = scalar_lea.vmem %s400_s27, 128 }
  0x3f   : > { %vm265_vm0 = vcmp.ne.s32.totalorder %v257_v16, 15  ;;  %vm323_vm1 = vcmp.ne.s32.totalorder %v315_v17, 1  ;;  %p662_p8 = scmp.ne.s32.totalorder %s400_s27, %s661_s19 }
  0x41   : > { %p663_p0 = pnand %p662_p8, %p820_p9 }
  0x43   : > { %p664_p3 = pneg %p663_p0 }
  0xac   : > { %v268_v2 = vpop.permute.xlu0 %267 }
  0xad   : > { %v270_v3 = vsub.f32 %v228_v0, %v268_v2 }
  0xae   : > { %v326_v12 = vpop.permute.xlu1 %325 }
  0xaf   : > { %272 = vrot.lane.b32.xlu1 %v270_v3, %s751_s20  ;;  %v328_v15 = vsub.f32 %v228_v0, %v326_v12  ;;  %s753_s20 = smov [#allocation8]  }
  0xb0   : > { %v289_v4 = vpop.permute.xlu0 %288 }
  0xb1   : > { %v291_v5 = vsub.f32 %v228_v0, %v289_v4  ;;  %v330_v18 = vrot.slane %v328_v15, 1 }
  0xb3   : > { %v292_v6 = vmul.f32 %v291_v5, %v291_v5  ;;  %v332_v21 = vsel %vm323_vm1, %v330_v18, 0.0 }
  0xb4   : > { %v333_v24 = vmul.f32 %v332_v21, %v332_v21 }
  0xb5   : > { %294 = vrot.lane.b32.xlu0 %v292_v6, %s752_s28  ;;  %s665_s28 = sshll.u32 %s753_s20, 4  ;;  %s666_s28 = int_to_ptr.vmem [resolvable:$false] %s665_s28 }
  0xb6   : > { %v335_v27 = vsel %vm334_vm4, %v333_v24, 0.0  ;;  %s667_s12 = scalar_lea.vmem %s666_s28, 256  ;;  %p668_p13 = scmp.lt.s32.totalorder %s400_s27, %s666_s28 }
  0xb7   : > { %p669_p5 = scmp.lt.s32.totalorder %s667_s12, %s661_s19 }
  0xb9   : > { %p670_p12 = por %p669_p5, %p668_p13 }
  0xbb   : > { %p671_p6 = pnand %p670_p12, %p664_p3 }
  0xd3   : > { %232 = vadd.xlane.f32.xlu1 %v231_v9 }
  0xd4   : > { %242 = vadd.xlane.f32.xlu0 %v241_v10 }
 0x121   : > { %v273_v19 = vpop.permute.xlu1 %272 }
 0x122   : > { %v275_v20 = vsel %vm265_vm0, %v273_v19, 0.0 }
 0x123   : > { %v276_v22 = vmul.f32 %v275_v20, %v275_v20 }
 0x125   : > { %v278_v23 = vsel %vm277_vm2, %v276_v22, 0.0 }
 0x126   : > { %279 = vadd.xlane.f32.xlu0 %v278_v23 }
 0x127   : > { %v295_v25 = vpop.permute.xlu0 %294 }
 0x128   : > { %v298_v26 = vsel %vm297_vm3, %v295_v25, 0.0 }
 0x129   : > { %299 = vadd.xlane.f32.xlu1 %v298_v26 }
 0x12a   : > { %336 = vadd.xlane.f32.xlu0 %v335_v27 }
 0x15c   : > { %v233_v28 = vpop.xlane.xlu1 %232 }
 0x15d   : > { %v243_v29 = vpop.xlane.xlu0 %242  ;;  %v234_v30 = vrot.slane %v233_v28, 4 }
 0x15e   : > { %v244_v31 = vrot.slane %v243_v29, 4 }
 0x15f   : > { %v235_v32 = vadd.f32 %v234_v30, %v233_v28 }
 0x160   : > { %v245_v33 = vadd.f32 %v244_v31, %v243_v29 }
 0x161   : > { %v236_v34 = vrot.slane %v235_v32, 2 }
 0x162   : > { %v246_v35 = vrot.slane %v245_v33, 2 }
 0x163   : > { %v237_v36 = vadd.f32 %v236_v34, %v235_v32 }
 0x164   : > { %v247_v37 = vadd.f32 %v246_v35, %v245_v33 }
 0x165   : > { %v238_v38 = vrot.slane %v237_v36, 1 }
 0x166   : > { %v248_v39 = vrot.slane %v247_v37, 1 }
 0x167   : > { %v239_v40 = vadd.f32 %v238_v38, %v237_v36 }
 0x168   : > { %v249_v41 = vadd.f32 %v248_v39, %v247_v37 }
 0x169   : > { %524 = vpush %v239_v40 }
 0x16a   : > { %526 = vpush %v249_v41 }
 0x19a   : > { %s525_s21 = spop %524 }
 0x19b   : > { %s527_s29 = spop %526  ;;  %v367_v63 = vstv %s525_s21 }
 0x19c   : > { %v371_v0 = vstv %s527_s29  ;;  %v368_v1 = vsel %vm365_vm5, %v367_v63, 0.0 }
 0x19d   : > { %v372_v2 = vsel %vm369_vm6, %v371_v0, 0.0 }
 0x19e   : > { %v373_v3 = vadd.f32 %v372_v2, %v368_v1 }
 0x1af   : > { %v280_v42 = vpop.xlane.xlu0 %279 }
 0x1b0   : > { %v281_v43 = vrot.slane %v280_v42, 4 }
 0x1b2   : > { %v282_v44 = vadd.f32 %v281_v43, %v280_v42  ;;  %v300_v45 = vpop.xlane.xlu1 %299 }
 0x1b3   : > { %v301_v46 = vrot.slane %v300_v45, 4  ;;  %v337_v47 = vpop.xlane.xlu0 %336 }
 0x1b4   : > { %v283_v48 = vrot.slane %v282_v44, 2  ;;  %v338_v49 = vrot.slane %v337_v47, 4 }
 0x1b5   : > { %v302_v50 = vadd.f32 %v301_v46, %v300_v45 }
 0x1b6   : > { %v339_v51 = vadd.f32 %v338_v49, %v337_v47  ;;  %v284_v52 = vadd.f32 %v283_v48, %v282_v44 }
 0x1b7   : > { %v303_v53 = vrot.slane %v302_v50, 2 }
 0x1b8   : > { %v340_v54 = vrot.slane %v339_v51, 2  ;;  %v285_v55 = vrot.slane %v284_v52, 1 }
 0x1b9   : > { %v304_v56 = vadd.f32 %v303_v53, %v302_v50 }
 0x1ba   : > { %v341_v57 = vadd.f32 %v340_v54, %v339_v51  ;;  %v286_v58 = vadd.f32 %v285_v55, %v284_v52 }
 0x1bb   : > { %v305_v59 = vrot.slane %v304_v56, 1 }
 0x1bc   : > { %528 = vpush %v286_v58  ;;  %v342_v60 = vrot.slane %v341_v57, 1 }
 0x1bd   : > { %v306_v61 = vadd.f32 %v305_v59, %v304_v56 }
 0x1be   : > { %v343_v62 = vadd.f32 %v342_v60, %v341_v57 }
 0x1bf   : > { %530 = vpush %v306_v61 }
 0x1c0   : > { %532 = vpush %v343_v62 }
 0x1ed   : > { %s529_s3 = spop %528 }
 0x1ee   : > { %v381_v4 = vstv %s529_s3 }
 0x1ef   : > { %v382_v8 = vsel %vm379_vm8, %v381_v4, 0.0 }
 0x1f0   : > { %s531_s7 = spop %530 }
 0x1f1   : > { %s533_s8 = spop %532 }
 0x1f2   : > { %s345_s30 = sadd.f32 %s533_s8, %s531_s7 }
 0x1f4   : > { %v376_v5 = vstv %s345_s30 }
 0x1f5   : > { %v377_v6 = vsel %vm374_vm7, %v376_v5, 0.0 }
 0x1f6   : > { %v378_v7 = vadd.f32 %v377_v6, %v373_v3 }
 0x1f8   : > { %v383_v9 = vadd.f32 %v382_v8, %v378_v7 }
 0x1fa   : > { %384 = vst [vmem:[%s213_s6] sm:$0xff] %v383_v9 }
 0x1fb   : > { %674 = shalt.err (!%p671_p6)
}
 0x1fc   : > { %s675_s26 = scalar_lea.hbm %s397_s16, 128  ;;  %s679_s29 = scalar_lea.hbm %s944_s2, 256 }
 0x1fd   : > { %p676_p7 = scmp.ne.s32.totalorder %s397_s16, %s675_s26  ;;  %p680_p4 = scmp.lt.s32.totalorder %s397_s16, %s944_s2 }
 0x1fe   : > { %p681_p10 = scmp.lt.s32.totalorder %s679_s29, %s675_s26 }
 0x1ff   : > { %p677_p1 = pnand %p676_p7, %p820_p9 }
 0x200   : > { %p682_p8 = por %p681_p10, %p680_p4 }
 0x201   : > { %p678_p2 = pneg %p677_p1 }
 0x203   : > { %p683_p0 = pnand %p682_p8, %p678_p2 }
 0x205   : > { %686 = shalt.err (!%p683_p0)
}
 0x206   : > { %538 = dma.vmem_to_hbm [thread:$0]  (%p820_p9), %s400_s27, 128, %s397_s16, %s386_s18  }
 0x207 PF: > { %s411_s8 = sand.u32 1, %s725_s9   ;;  %p951_p3 = scmp.ge.s32.totalorder %s745_s14, 2 }
 0x208   : > { %s412_s30 = scalar_lea.sflag [#allocation5], %s411_s8 }
 0x209   : > { %p548_p13 = pnand %p951_p3, %p827_p11 }
 0x20b   : > { %p549_p5 = pneg %p548_p13 }
 0x20d   : > { %720 = dma.done.wait (%p549_p5), %s412_s30, 128  }
 0x20e   : > { %722 = vsyncadd (%p549_p5), %s412_s30, 4294967168  ;;  %s21_s14 = sadd.s32 1, %s745_s14   ;;  %s952_s9 = smov %s729_s10 }
 0x20f   : > { %p18_p12 = scmp.ge.s32.totalorder %s21_s14, 4   ;;  %s953_s10 = smov %s733_s11 }
 0x210   : > { %s954_s11 = smov %s825_s23  ;;  %s955_s12 = smov %s741_s13 }
 0x211   : > { %s956_s13 = smov %s958_s17  ;;  %20 = sbr.rel (!%p18_p12) target bundleno = 8 (0x8), region = 102 }
 0x216   :  { %417 = vsyncpa [#allocation4], 1 }
 0x217   :  { %419 = vsyncpa [#allocation4 + $0x1], 1 }
 0x218   :  { %420 = vsyncpa [#allocation7], 1 }
 0x219   :  { %422 = vsyncpa [#allocation7 + $0x1], 1 }
 0x21a   :  { %423 = vsyncpa [#allocation5], 1 }
 0x21b   :  { %425 = vsyncpa [#allocation5 + $0x1], 1 }

</bundles_post_ra>
